<compile_context>
chip_gen: v7x
topology: tpu7x:2x2x1
jax: 0.10.0
libtpu: 0.0.40
codegen_flags: <defaults>
</compile_context>

<pallas_src>
import functools

import jax
import jax.numpy as jnp
from jax import lax
from jax.experimental import pallas as pl
from jax.experimental.pallas import tpu as pltpu


def eac_kernel(x_ref, pool_ref, wkq_ref, wv_ref, u_ref, bkq_ref, bv_ref, sc_ref,
               out_ref, a_ref, c_ref, v_ref, *, bf16_exp):
    # x_ref:    (1, Cp, TN) f32   query-pixel tile (channel-major)
    # pool_ref: (1, Cp, M)  bf16  full pooled image (single-buffered)
    # wkq_ref:  (Cp, Cp)    bf16  Wk^T @ Wq
    # wv_ref:   (Cp, Cp)    bf16  Wv
    # u_ref:    (Cp, 1)     bf16  Wk^T @ bq
    # bkq_ref:  (1, Cp)     f32   bk @ Wq
    # bv_ref:   (Cp, 1)     f32   bv
    # sc_ref:   (2,)        f32   SMEM: [gamma, bk . bq]
    # a_ref:    (M, Cp)     bf16  scratch: folded key  A = K^T @ Wq
    # c_ref:    (M, 1)      f32   scratch: folded bias c = K^T @ bq
    # v_ref:    (Cp, M)     bf16  scratch: gamma * V

    # --- cache A, c, gamma*V once per batch element (first N-tile only) ------
    @pl.when(pl.program_id(1) == 0)
    def _():
        pool = pool_ref[0]                                          # (Cp, M)
        # A = pool^T @ (Wk^T Wq) + bk@Wq   -> (M, Cp)
        a = lax.dot_general(pool, wkq_ref[...], (((0,), (0,)), ((), ())),
                            preferred_element_type=jnp.float32) + bkq_ref[...]
        a_ref[...] = a.astype(jnp.bfloat16)
        # c = pool^T @ (Wk^T bq) + bk.bq   -> (M, 1)
        c_ref[...] = lax.dot_general(pool, u_ref[...], (((0,), (0,)), ((), ())),
                                     preferred_element_type=jnp.float32) + sc_ref[1]
        # gamma * V = gamma * (Wv @ pool + bv)  -> (Cp, M)
        v = jnp.dot(wv_ref[...], pool,
                    preferred_element_type=jnp.float32) + bv_ref[...]
        v_ref[...] = (sc_ref[0] * v).astype(jnp.bfloat16)

    # --- per N-tile attention -------------------------------------------------
    x = x_ref[0]                                                    # (Cp, TN) f32
    # energy^T[m, n] = sum_c A[m, c] * x[c, n] + c[m]
    s = jnp.dot(a_ref[...], x.astype(jnp.bfloat16),
                preferred_element_type=jnp.float32) + c_ref[...]    # (M, TN) f32

    # Exact softmax over the full pooled-pixel axis M (axis 0).
    s_max = jnp.max(s, axis=0, keepdims=True)                       # (1, TN)
    if bf16_exp:
        # v6e/v7x: bf16 EUP path (~2x exp throughput); f32 row-sum.
        p = jnp.exp((s - s_max).astype(jnp.bfloat16))               # (M, TN) bf16
        denom = jnp.sum(p.astype(jnp.float32), axis=0, keepdims=True)
        attn = p * pl.reciprocal(denom, approx=True).astype(jnp.bfloat16)
    else:
        # v5e / unknown: keep elementwise math in f32 (no bf16 VPU/EUP there).
        p = jnp.exp(s - s_max)                                      # (M, TN) f32
        denom = jnp.sum(p, axis=0, keepdims=True)
        attn = (p * pl.reciprocal(denom, approx=True)).astype(jnp.bfloat16)

    # out[c, n] = sum_m (gamma*V)[c, m] * attn[m, n]   (gamma already folded)
    out = jnp.dot(v_ref[...], attn,
                  preferred_element_type=jnp.float32)               # (Cp, TN) f32

    # Residual epilogue in f32. Padded channels: out rows = 0 and x rows = 0.
    out_ref[0] = (out + x).astype(out_ref.dtype)


def _device_vmem_plan():
    """(vmem_limit_bytes, use_bf16_exp) derived from the TPU generation."""
    kind = ""
    try:
        kind = jax.devices()[0].device_kind.lower()
    except Exception:
        pass
    if "v7" in kind or "7x" in kind:
        return 56 * (1 << 20), True     # 64 MiB physical VMEM, bf16 EUP
    if "v6" in kind:
        return 100 * (1 << 20), True    # 128 MiB physical VMEM, bf16 EUP
    if "v5" in kind:
        return 100 * (1 << 20), False   # 128 MiB physical VMEM, no bf16 EUP
    return 48 * (1 << 20), False        # unknown: conservative


def _pick_tn(N, M, Cp, vmem_limit, tn_cap=2048):
    """Largest lane-dense N-tile whose intermediates fit the VMEM budget."""
    fixed = (Cp * M * 2            # pool (single buffer, bf16)
             + 2 * Cp * Cp * 2     # wkq + wv (single buffer, bf16)
             + 3 * Cp * 128 * 4    # u / bkq / bv (padded, generous)
             + M * Cp * 2          # A scratch (bf16)
             + Cp * M * 2          # gamma*V scratch (bf16)
             + M * 128 * 4)        # c scratch (lane-padded f32)
    budget = max(vmem_limit - fixed - (6 << 20), 2 << 20)   # compiler headroom

    def per_tile(tn):
        return (4 * Cp * tn * 4    # x + out blocks, double-buffered, f32
                + 14 * tn * M      # energy f32 + exp + attn bf16 intermediates
                + 12 * Cp * tn)    # bf16 x copy / f32 out intermediate

    if N % 128 != 0 or N <= 128:
        # TODO(synk): odd spatial sizes fall back to a single full-extent tile.
        return N
    cands = sorted({d for d in range(128, min(N, tn_cap) + 1, 128) if N % d == 0},
                   reverse=True)
    for tn in cands:
        if per_tile(tn) <= budget:
            return tn
    return cands[-1]


def eac_module_pallas(x_nchw, params):
    """Forward pass of EAC_Module. x_nchw: (B, C, H, W) float32."""
    B, C, H, W = x_nchw.shape
    D = params["wq"].shape[0]
    assert D == C, "EAC_Module's .view(B, C, H, W) requires out_dim == in_dim"
    assert H % 2 == 0 and W % 2 == 0, "2x2 stride-2 max pool needs even H, W"
    N = H * W
    M = (H // 2) * (W // 2)
    Cp = ((C + 127) // 128) * 128

    vmem_limit, bf16_exp = _device_vmem_plan()
    TN = _pick_tn(N, M, Cp, vmem_limit)

    # ---- wrapper glue (channel-major, no NCHW<->NHWC transposes) ------------
    x_cm = x_nchw.reshape(B, C, N).astype(jnp.float32)
    pool_cm = x_nchw.reshape(B, C, H // 2, 2, W // 2, 2).max(axis=(3, 5))
    pool_cm = pool_cm.reshape(B, C, M)
    if Cp != C:
        # TODO(synk): for C << 128 the pad inflates x/out HBM traffic; an
        # unpadded-C kernel I/O path would remove it.
        x_cm = jnp.pad(x_cm, ((0, 0), (0, Cp - C), (0, 0)))
        pool_cm = jnp.pad(pool_cm, ((0, 0), (0, Cp - C), (0, 0)))
    pool_cm = pool_cm.astype(jnp.bfloat16)

    # Pre-fuse the query projection into the key path (tiny, once per call).
    wq, wk, wv = params["wq"], params["wk"], params["wv"]
    bq, bk, bv = params["bq"], params["bk"], params["bv"]
    wkq = wk.T @ wq                       # (C, C): Wk^T Wq
    u = wk.T @ bq                         # (C,):   Wk^T bq
    bkq = bk @ wq                         # (C,):   bk Wq
    t = jnp.dot(bk, bq)                   # scalar: bk . bq
    gamma = params["gamma"].reshape(()).astype(jnp.float32)
    scalars = jnp.stack([gamma, t.astype(jnp.float32)])            # (2,) f32

    def pad2(a, rows, cols):
        z = jnp.zeros((rows, cols), jnp.float32)
        return z.at[:a.shape[0], :a.shape[1]].set(a)

    wkq_p = pad2(wkq, Cp, Cp).astype(jnp.bfloat16)
    wv_p = pad2(wv, Cp, Cp).astype(jnp.bfloat16)
    u_p = pad2(u.reshape(C, 1), Cp, 1).astype(jnp.bfloat16)
    bkq_p = pad2(bkq.reshape(1, C), 1, Cp)                         # f32
    bv_p = pad2(bv.reshape(C, 1), Cp, 1)                           # f32

    inv1 = pl.Buffered(1)   # single-buffer grid-invariant inputs (VMEM saver)

    out_p = pl.pallas_call(
        functools.partial(eac_kernel, bf16_exp=bf16_exp),
        out_shape=jax.ShapeDtypeStruct((B, Cp, N), jnp.float32),
        grid_spec=pltpu.PrefetchScalarGridSpec(
            num_scalar_prefetch=0,
            grid=(B, N // TN),
            in_specs=[
                pl.BlockSpec((1, Cp, TN), lambda b, n: (b, 0, n)),            # x
                pl.BlockSpec((1, Cp, M), lambda b, n: (b, 0, 0),
                             pipeline_mode=inv1),                            # pool
                pl.BlockSpec((Cp, Cp), lambda b, n: (0, 0),
                             pipeline_mode=inv1),                            # Wk^T Wq
                pl.BlockSpec((Cp, Cp), lambda b, n: (0, 0),
                             pipeline_mode=inv1),                            # Wv
                pl.BlockSpec((Cp, 1), lambda b, n: (0, 0),
                             pipeline_mode=inv1),                            # Wk^T bq
                pl.BlockSpec((1, Cp), lambda b, n: (0, 0),
                             pipeline_mode=inv1),                            # bk Wq
                pl.BlockSpec((Cp, 1), lambda b, n: (0, 0),
                             pipeline_mode=inv1),                            # bv
                pl.BlockSpec(memory_space=pltpu.MemorySpace.SMEM),           # scalars
            ],
            out_specs=pl.BlockSpec((1, Cp, TN), lambda b, n: (b, 0, n)),
            scratch_shapes=[
                pltpu.VMEM((M, Cp), jnp.bfloat16),   # A = K^T Wq
                pltpu.VMEM((M, 1), jnp.float32),     # c = K^T bq
                pltpu.VMEM((Cp, M), jnp.bfloat16),   # gamma * V
            ],
        ),
        compiler_params=pltpu.CompilerParams(
            # batch axis independent -> parallel (both TCs on v7x); N-tile axis
            # must stay sequential because of the per-batch A/c/V scratch cache.
            # TODO(synk): for B < num_cores a core-parallel split of the N axis
            # (recomputing A/c/V per core) would recover the idle TensorCore.
            dimension_semantics=("parallel", "arbitrary"),
            vmem_limit_bytes=vmem_limit,
        ),
    )(x_cm, pool_cm, wkq_p, wv_p, u_p, bkq_p, bv_p, scalars)

    return out_p[:, :C, :].reshape(B, C, H, W)


def eac_module_reference(x, params):
    """Pure-JAX f32 reference mirroring the PyTorch forward exactly."""
    B, C, H, W = x.shape
    pool = x.reshape(B, C, H // 2, 2, W // 2, 2).max(axis=(3, 5))

    def conv1x1(z, w, b):
        return jnp.einsum("bchw,dc->bdhw", z, w) + b[None, :, None, None]

    q = conv1x1(x, params["wq"], params["bq"]).reshape(B, -1, H * W).transpose(0, 2, 1)
    k = conv1x1(pool, params["wk"], params["bk"]).reshape(B, -1, (H // 2) * (W // 2))
    energy = jnp.einsum("bnd,bdm->bnm", q, k)
    attn = jax.nn.softmax(energy, axis=-1)
    v = conv1x1(pool, params["wv"], params["bv"]).reshape(B, -1, (H // 2) * (W // 2))
    out = jnp.einsum("bdm,bnm->bdn", v, attn).reshape(B, C, H, W)
    return params["gamma"] * out + x


if __name__ == "__main__":
    B, C, H, W = 2, 4, 16, 16
    D = C  # out_dim must equal in_dim for the .view(B, C, H, W) to be valid

    key = jax.random.PRNGKey(0)
    kx, kwq, kbq, kwk, kbk, kwv, kbv = jax.random.split(key, 7)

    x = jax.random.normal(kx, (B, C, H, W), dtype=jnp.float32)
    scale = 1.0 / jnp.sqrt(jnp.float32(C))
    params = {
        "wq": scale * jax.random.normal(kwq, (D, C), dtype=jnp.float32),
        "bq": 0.1 * jax.random.normal(kbq, (D,), dtype=jnp.float32),
        "wk": scale * jax.random.normal(kwk, (D, C), dtype=jnp.float32),
        "bk": 0.1 * jax.random.normal(kbk, (D,), dtype=jnp.float32),
        "wv": scale * jax.random.normal(kwv, (D, C), dtype=jnp.float32),
        "bv": 0.1 * jax.random.normal(kbv, (D,), dtype=jnp.float32),
        # module initializes gamma = 0; use a nonzero value so the attention
        # branch is actually exercised in this synthetic test.
        "gamma": jnp.array([0.5], dtype=jnp.float32),
    }

    eac_fn = jax.jit(eac_module_pallas)
    out = jax.block_until_ready(eac_fn(x, params))

    ref = eac_module_reference(x, params)
    assert out.shape == (B, C, H, W)
    # bf16 attention path (fused bf16 weights, bf16 exp on v6e+, approx recip)
    # -> slightly looser tolerance than f32.
    if not bool(jnp.allclose(out, ref, rtol=2e-2, atol=3e-2)):
        raise AssertionError("Pallas output does not match JAX reference")

    print("KERNEL_OK")
</pallas_src>

<mosaic_0001>
module attributes {stable_mosaic.version = 11 : i64} {
  func.func @eac_kernel(%arg0: i32, %arg1: i32, %arg2: memref<1x128x256xf32, #tpu.memory_space<vmem>>, %arg3: memref<1x128x64xbf16, #tpu.memory_space<vmem>>, %arg4: memref<128x128xbf16, #tpu.memory_space<vmem>>, %arg5: memref<128x128xbf16, #tpu.memory_space<vmem>>, %arg6: memref<128x1xbf16, #tpu.memory_space<vmem>>, %arg7: memref<1x128xf32, #tpu.memory_space<vmem>>, %arg8: memref<128x1xf32, #tpu.memory_space<vmem>>, %arg9: memref<2xf32, #tpu.memory_space<smem>>, %arg10: memref<1x128x256xf32, #tpu.memory_space<vmem>>, %arg11: memref<64x128xbf16, #tpu.memory_space<vmem>>, %arg12: memref<64x1xf32, #tpu.memory_space<vmem>>, %arg13: memref<128x64xbf16, #tpu.memory_space<vmem>>) attributes {dimension_semantics = [#tpu.dimension_semantics<parallel>, #tpu.dimension_semantics<arbitrary>], iteration_bounds = array<i64: 2, 1>, scalar_prefetch = 0 : i64, scratch_operands = 3 : i64, tpu.core_type = #tpu.core_type<tc>, window_params = [{transform_indices = @transform_0, window_bounds = array<i64: 1, 128, 256>}, {pipeline_mode = #tpu.pipeline_mode<synchronous>, transform_indices = @transform_1, window_bounds = array<i64: 1, 128, 64>}, {pipeline_mode = #tpu.pipeline_mode<synchronous>, transform_indices = @transform_2, window_bounds = array<i64: 128, 128>}, {pipeline_mode = #tpu.pipeline_mode<synchronous>, transform_indices = @transform_3, window_bounds = array<i64: 128, 128>}, {pipeline_mode = #tpu.pipeline_mode<synchronous>, transform_indices = @transform_4, window_bounds = array<i64: 128, 1>}, {pipeline_mode = #tpu.pipeline_mode<synchronous>, transform_indices = @transform_5, window_bounds = array<i64: 1, 128>}, {pipeline_mode = #tpu.pipeline_mode<synchronous>, transform_indices = @transform_6, window_bounds = array<i64: 128, 1>}, {transform_indices = @transform_7, window_bounds = array<i64: 2>}, {transform_indices = @transform_8, window_bounds = array<i64: 1, 128, 256>}]} {
    %c0_i32 = arith.constant 0 : i32
    %0 = arith.cmpi eq, %arg1, %c0_i32 : i32
    %1 = arith.extui %0 : i1 to i32
    %c0_i32_0 = arith.constant 0 : i32
    %2 = arith.cmpi ne, %1, %c0_i32_0 : i32
    scf.if %2 {
      %c0_15 = arith.constant 0 : index
      %c0_16 = arith.constant 0 : index
      %c0_17 = arith.constant 0 : index
      %28 = vector.load %arg3[%c0_15, %c0_16, %c0_17] : memref<1x128x64xbf16, #tpu.memory_space<vmem>>, vector<1x128x64xbf16>
      %29 = vector.shape_cast %28 : vector<1x128x64xbf16> to vector<128x64xbf16>
      %c0_18 = arith.constant 0 : index
      %c0_19 = arith.constant 0 : index
      %30 = vector.load %arg4[%c0_18, %c0_19] : memref<128x128xbf16, #tpu.memory_space<vmem>>, vector<128x128xbf16>
      %cst_20 = arith.constant dense<0.000000e+00> : vector<64x128xf32>
      %31 = tpu.matmul %29, %30, %cst_20 {dimension_numbers = #tpu.dot_dimension_numbers<[0], [0], [1], [1], [0, 1, 1, 1], [], []>} : vector<128x64xbf16>, vector<128x128xbf16>, vector<64x128xf32> -> vector<64x128xf32>
      %c0_21 = arith.constant 0 : index
      %c0_22 = arith.constant 0 : index
      %32 = vector.load %arg7[%c0_21, %c0_22] : memref<1x128xf32, #tpu.memory_space<vmem>>, vector<1x128xf32>
      %33 = vector.broadcast %32 : vector<1x128xf32> to vector<64x128xf32>
      %34 = arith.addf %31, %33 : vector<64x128xf32>
      %35 = arith.truncf %34 : vector<64x128xf32> to vector<64x128xbf16>
      %c0_23 = arith.constant 0 : index
      %c0_24 = arith.constant 0 : index
      %36 = vector.load %arg11[%c0_23, %c0_24] : memref<64x128xbf16, #tpu.memory_space<vmem>>, vector<64x128xbf16>
      tpu.vector_store %arg11[%c0_23, %c0_24], %35 {strides = array<i32>} : memref<64x128xbf16, #tpu.memory_space<vmem>>, vector<64x128xbf16>,
      %c0_25 = arith.constant 0 : index
      %c0_26 = arith.constant 0 : index
      %37 = vector.load %arg6[%c0_25, %c0_26] : memref<128x1xbf16, #tpu.memory_space<vmem>>, vector<128x1xbf16>
      %cst_27 = arith.constant dense<0.000000e+00> : vector<64x1xf32>
      %38 = tpu.matmul %29, %37, %cst_27 {dimension_numbers = #tpu.dot_dimension_numbers<[0], [0], [1], [1], [0, 1, 1, 1], [], []>} : vector<128x64xbf16>, vector<128x1xbf16>, vector<64x1xf32> -> vector<64x1xf32>
      %c1 = arith.constant 1 : index
      %39 = memref.load %arg9[%c1] : memref<2xf32, #tpu.memory_space<smem>>
      %40 = vector.broadcast %39 : f32 to vector<64x1xf32>
      %41 = arith.addf %38, %40 : vector<64x1xf32>
      %c0_28 = arith.constant 0 : index
      %c0_29 = arith.constant 0 : index
      %42 = vector.load %arg12[%c0_28, %c0_29] : memref<64x1xf32, #tpu.memory_space<vmem>>, vector<64x1xf32>
      tpu.vector_store %arg12[%c0_28, %c0_29], %41 {strides = array<i32>} : memref<64x1xf32, #tpu.memory_space<vmem>>, vector<64x1xf32>,
      %c0_30 = arith.constant 0 : index
      %c0_31 = arith.constant 0 : index
      %43 = vector.load %arg5[%c0_30, %c0_31] : memref<128x128xbf16, #tpu.memory_space<vmem>>, vector<128x128xbf16>
      %cst_32 = arith.constant dense<0.000000e+00> : vector<128x64xf32>
      %44 = tpu.matmul %43, %29, %cst_32 {dimension_numbers = #tpu.dot_dimension_numbers<[1], [0], [0], [1], [0, 0, 1, 1], [], []>} : vector<128x128xbf16>, vector<128x64xbf16>, vector<128x64xf32> -> vector<128x64xf32>
      %c0_33 = arith.constant 0 : index
      %c0_34 = arith.constant 0 : index
      %45 = vector.load %arg8[%c0_33, %c0_34] : memref<128x1xf32, #tpu.memory_space<vmem>>, vector<128x1xf32>
      %46 = vector.broadcast %45 : vector<128x1xf32> to vector<128x64xf32>
      %47 = arith.addf %44, %46 : vector<128x64xf32>
      %c0_35 = arith.constant 0 : index
      %48 = memref.load %arg9[%c0_35] : memref<2xf32, #tpu.memory_space<smem>>
      %49 = vector.broadcast %48 : f32 to vector<128x64xf32>
      %50 = arith.mulf %49, %47 : vector<128x64xf32>
      %51 = arith.truncf %50 : vector<128x64xf32> to vector<128x64xbf16>
      %c0_36 = arith.constant 0 : index
      %c0_37 = arith.constant 0 : index
      %52 = vector.load %arg13[%c0_36, %c0_37] : memref<128x64xbf16, #tpu.memory_space<vmem>>, vector<128x64xbf16>
      tpu.vector_store %arg13[%c0_36, %c0_37], %51 {strides = array<i32>} : memref<128x64xbf16, #tpu.memory_space<vmem>>, vector<128x64xbf16>,
    } else {
    }
    %c0 = arith.constant 0 : index
    %c0_1 = arith.constant 0 : index
    %c0_2 = arith.constant 0 : index
    %3 = vector.load %arg2[%c0, %c0_1, %c0_2] : memref<1x128x256xf32, #tpu.memory_space<vmem>>, vector<1x128x256xf32>
    %4 = vector.shape_cast %3 : vector<1x128x256xf32> to vector<128x256xf32>
    %c0_3 = arith.constant 0 : index
    %c0_4 = arith.constant 0 : index
    %5 = vector.load %arg11[%c0_3, %c0_4] : memref<64x128xbf16, #tpu.memory_space<vmem>>, vector<64x128xbf16>
    %6 = arith.truncf %4 : vector<128x256xf32> to vector<128x256xbf16>
    %cst = arith.constant dense<0.000000e+00> : vector<64x256xf32>
    %7 = tpu.matmul %5, %6, %cst {dimension_numbers = #tpu.dot_dimension_numbers<[1], [0], [0], [1], [0, 0, 1, 1], [], []>} : vector<64x128xbf16>, vector<128x256xbf16>, vector<64x256xf32> -> vector<64x256xf32>
    %c0_5 = arith.constant 0 : index
    %c0_6 = arith.constant 0 : index
    %8 = vector.load %arg12[%c0_5, %c0_6] : memref<64x1xf32, #tpu.memory_space<vmem>>, vector<64x1xf32>
    %9 = vector.broadcast %8 : vector<64x1xf32> to vector<64x256xf32>
    %10 = arith.addf %7, %9 : vector<64x256xf32>
    %cst_7 = arith.constant dense<0xFF800000> : vector<256xf32>
    %11 = vector.multi_reduction <maximumf>, %10, %cst_7 [0] : vector<64x256xf32> to vector<256xf32>
    %12 = vector.shape_cast %11 : vector<256xf32> to vector<1x256xf32>
    %13 = vector.broadcast %12 : vector<1x256xf32> to vector<64x256xf32>
    %14 = arith.subf %10, %13 : vector<64x256xf32>
    %15 = math.exp %14 : vector<64x256xf32>
    %cst_8 = arith.constant dense<0.000000e+00> : vector<256xf32>
    %16 = vector.multi_reduction <add>, %15, %cst_8 [0] : vector<64x256xf32> to vector<256xf32>
    %17 = vector.shape_cast %16 : vector<256xf32> to vector<1x256xf32>
    %18 = tpu.reciprocal %17 {approx = true} : vector<1x256xf32> -> vector<1x256xf32>
    %19 = vector.broadcast %18 : vector<1x256xf32> to vector<64x256xf32>
    %20 = arith.mulf %15, %19 : vector<64x256xf32>
    %21 = arith.truncf %20 : vector<64x256xf32> to vector<64x256xbf16>
    %c0_9 = arith.constant 0 : index
    %c0_10 = arith.constant 0 : index
    %22 = vector.load %arg13[%c0_9, %c0_10] : memref<128x64xbf16, #tpu.memory_space<vmem>>, vector<128x64xbf16>
    %cst_11 = arith.constant dense<0.000000e+00> : vector<128x256xf32>
    %23 = tpu.matmul %22, %21, %cst_11 {dimension_numbers = #tpu.dot_dimension_numbers<[1], [0], [0], [1], [0, 0, 1, 1], [], []>} : vector<128x64xbf16>, vector<64x256xbf16>, vector<128x256xf32> -> vector<128x256xf32>
    %24 = arith.addf %23, %4 : vector<128x256xf32>
    %c0_12 = arith.constant 0 : index
    %c0_13 = arith.constant 0 : index
    %c0_14 = arith.constant 0 : index
    %25 = vector.load %arg10[%c0_12, %c0_13, %c0_14] : memref<1x128x256xf32, #tpu.memory_space<vmem>>, vector<1x128x256xf32>
    %26 = vector.shape_cast %25 : vector<1x128x256xf32> to vector<128x256xf32>
    %27 = vector.shape_cast %24 : vector<128x256xf32> to vector<1x128x256xf32>
    tpu.vector_store %arg10[%c0_12, %c0_13, %c0_14], %27 {strides = array<i32>} : memref<1x128x256xf32, #tpu.memory_space<vmem>>, vector<1x128x256xf32>,
    return
  }
  func.func @transform_0(%arg0: i32, %arg1: i32) -> (i32, i32, i32) {
    %c0_i32 = arith.constant 0 : i32
    %c0_i32_0 = arith.constant 0 : i32
    return %arg0, %c0_i32, %arg1 : i32, i32, i32
  }
  func.func @transform_1(%arg0: i32, %arg1: i32) -> (i32, i32, i32) {
    %c0_i32 = arith.constant 0 : i32
    %c0_i32_0 = arith.constant 0 : i32
    %c0_i32_1 = arith.constant 0 : i32
    return %arg0, %c0_i32, %c0_i32_0 : i32, i32, i32
  }
  func.func @transform_2(%arg0: i32, %arg1: i32) -> (i32, i32) {
    %c0_i32 = arith.constant 0 : i32
    %c0_i32_0 = arith.constant 0 : i32
    %c0_i32_1 = arith.constant 0 : i32
    return %c0_i32, %c0_i32_0 : i32, i32
  }
  func.func @transform_3(%arg0: i32, %arg1: i32) -> (i32, i32) {
    %c0_i32 = arith.constant 0 : i32
    %c0_i32_0 = arith.constant 0 : i32
    %c0_i32_1 = arith.constant 0 : i32
    return %c0_i32, %c0_i32_0 : i32, i32
  }
  func.func @transform_4(%arg0: i32, %arg1: i32) -> (i32, i32) {
    %c0_i32 = arith.constant 0 : i32
    %c0_i32_0 = arith.constant 0 : i32
    %c0_i32_1 = arith.constant 0 : i32
    return %c0_i32, %c0_i32_0 : i32, i32
  }
  func.func @transform_5(%arg0: i32, %arg1: i32) -> (i32, i32) {
    %c0_i32 = arith.constant 0 : i32
    %c0_i32_0 = arith.constant 0 : i32
    %c0_i32_1 = arith.constant 0 : i32
    return %c0_i32, %c0_i32_0 : i32, i32
  }
  func.func @transform_6(%arg0: i32, %arg1: i32) -> (i32, i32) {
    %c0_i32 = arith.constant 0 : i32
    %c0_i32_0 = arith.constant 0 : i32
    %c0_i32_1 = arith.constant 0 : i32
    return %c0_i32, %c0_i32_0 : i32, i32
  }
  func.func @transform_7(%arg0: i32, %arg1: i32) -> i32 {
    %c0_i32 = arith.constant 0 : i32
    %c0_i32_0 = arith.constant 0 : i32
    return %c0_i32 : i32
  }
  func.func @transform_8(%arg0: i32, %arg1: i32) -> (i32, i32, i32) {
    %c0_i32 = arith.constant 0 : i32
    %c0_i32_0 = arith.constant 0 : i32
    return %arg0, %c0_i32, %arg1 : i32, i32, i32
  }
}

</mosaic_0001>

<bundles_post_ra>
// kernel: eac_module_pallas.1
= control target key start
LH: loop header
LB: loop body
LE: loop exit
PB: predicated region body
PF: predicated region fallthrough
CT: control target
= control target key end

     0   :  { %13 = vsyncpa [#allocation6], 0  ;;  %s2008_s27 = smov 0   ;;  %s2010_s28 = smov 0   ;;  %s2553_s0 = inlined_call_operand.vmem [shape: f32[2,128,256], index: 0, kind: input, shape index: {}]   ;;  %s2554_s1 = inlined_call_operand.vmem [shape: bf16[2,128,64], index: 1, kind: input, shape index: {}]   ;;  %s2555_s2 = inlined_call_operand.vmem [shape: bf16[128,128], index: 2, kind: input, shape index: {}]   ;;  %s2556_s3 = inlined_call_operand.vmem [shape: bf16[128,128], index: 3, kind: input, shape index: {}]   ;;  %s2557_s4 = inlined_call_operand.vmem [shape: bf16[128,1], index: 4, kind: input, shape index: {}]   ;;  %s2558_s5 = inlined_call_operand.vmem [shape: f32[1,128], index: 5, kind: input, shape index: {}]   ;;  %s2559_s6 = inlined_call_operand.vmem [shape: f32[128,1], index: 6, kind: input, shape index: {}]   ;;  %s2560_s7 = inlined_call_operand.vmem [shape: f32[2], index: 7, kind: input, shape index: {}]   ;;  %s2561_s8 = inlined_call_operand.vmem [shape: f32[2,128,256], index: 8, kind: output, shape index: {}]  }
   0x1   :  { %s2012_s29 = smov 0  }
   0x2 LB: > { %s1631_s30 = sadd.s32 4294967295, %s1959_s29   ;;  %s31_s9 = sadd.s32 1, %s1955_s28  ;;  %s1959_s29 = sphi %s2012_s29, %s19_s29   ;;  %s1955_s28 = sphi %s2010_s28, %s2595_s28   ;;  %s1951_s27 = sphi %s2008_s27, %s2594_s27  }
   0x3   : > { %p33_p0 = scmp.ge.s32.totalorder %s31_s9, 2  ;;  %p1633_p1 = scmp.ge.s32.totalorder %s1959_s29, 1 }
   0x4   : > { %p244_p2 = scmp.lt.s32.totalorder %s1959_s29, 3  ;;  %p2033_p4 = scmp.eq.s32.totalorder %s1631_s30, 0 }
   0x5   : > { %s2597_s9 = smov (%p33_p0, %s31_s9), 0  ;;  %s280_s14 = sshll.u32 %s2560_s7, 4  ;;  %s281_s14 = int_to_ptr.vmem [resolvable:$true] %s280_s14 }
   0x6   : > { %p2029_p3 = pnand %p1633_p1, %p244_p2  ;;  %s1918_s15 = scalar_lea.vmem %s281_s14, 16 }
   0x7   : > { %p1919_p7 = scmp.ne.s32.totalorder %s281_s14, %s1918_s15  ;;  %p1926_p11 = scmp.lt.s32.totalorder %s281_s14, %s281_s14 }
   0x8   : > { %p1815_p5 = pneg %p2029_p3  ;;  %p1927_p12 = scmp.lt.s32.totalorder %s1918_s15, %s1918_s15 }
   0xa   : > { %p1816_p6 = pnand %p2033_p4, %p1815_p5  ;;  %p1928_p13 = por %p1927_p12, %p1926_p11 }
   0xc   : > { %p1920_p8 = pneg %p1816_p6 }
   0xe   : > { %p1921_p9 = pnand %p1920_p8, %p1919_p7 }
  0x10   : > { %p1922_p10 = pneg %p1921_p9 }
  0x12   : > { %p1929_p0 = pnand %p1928_p13, %p1922_p10 }
  0x14   : > { %1932 = shalt.err (!%p1929_p0)
}
  0x15   : > { %s1961_s16 = smov [#allocation5]   ;;  %306 = sbr.rel (%p2029_p3) target bundleno = 972 (0x3cc), region = 52 }
  0x16   : > { %1818 = dma.vmem_to_smem (!%p1816_p6), %s281_s14, 16, %s1961_s16, [#allocation6]  }
  0x1c   : > { %1946 = dma.done.wait (%p2033_p4), [#allocation6], 16  }
  0x1d   : > { %1948 = vsyncadd (%p2033_p4), [#allocation6], 4294967280 }
  0x1e   : > { %312 = sfence }
  0x1f   : > { %p355_p1 = scmp.lt.s32.totalorder %s1951_s27, 1  ;;  %v1857_v0 = vld [vmem:[%s2555_s2] sm:$0xff]   ;;  %v1858_v1 = vld [vmem:[%s2555_s2 + $0x8] sm:$0xff]   ;;  %v1859_v2 = vld [vmem:[%s2555_s2 + $0x10] sm:$0xff]   ;;  %s1661_s19 = sld [smem:[#allocation5 + $0x1]]  ;;  %vm739_vm0 = vcmask 7168  }
  0x20   : > { %1731 = vmatprep.subr.bf16.mxu1 %v1857_v0  ;;  %v1860_v4 = vld [vmem:[%s2555_s2 + $0x18] sm:$0xff]   ;;  %v1861_v6 = vld [vmem:[%s2555_s2 + $0x20] sm:$0xff]   ;;  %v1862_v9 = vld [vmem:[%s2555_s2 + $0x28] sm:$0xff]   ;;  %s1005_s23 = sld [smem:[#allocation5]]  ;;  %vm1031_vm1 = vcmask 523264  }
  0x21   : > { %s2599_s27 = smov (!%p355_p1, %s1951_s27), 1  ;;  %1732 = vmatpush3.bf16.msra.mxu1 %v1857_v0  ;;  %v1863_v11 = vld [vmem:[%s2555_s2 + $0x30] sm:$0xff]   ;;  %v1864_v13 = vld [vmem:[%s2555_s2 + $0x38] sm:$0xff]   ;;  %v1865_v15 = vld [vmem:[%s2557_s4] sm:$0xff]  }
  0x22   : > { %s1689_s21 = sshll.u32 %s2599_s27, 6  ;;  %1733 = vmatprep.subr.bf16.mxu1 %v1858_v1  ;;  %v1873_v17 = vld [vmem:[%s2556_s3] sm:$0xff]   ;;  %v1874_v18 = vld [vmem:[%s2556_s3 + $0x8] sm:$0xff]   ;;  %v1875_v19 = vld [vmem:[%s2556_s3 + $0x10] sm:$0xff]  }
  0x23   : > { %s2067_s26 = scalar_lea.vmem %s2554_s1, %s1689_s21  ;;  %1795 = vmatprep.mubr.bf16.mxu0 %v1873_v17  ;;  %v1876_v20 = vld [vmem:[%s2556_s3 + $0x18] sm:$0xff]   ;;  %v1866_v22 = vld [vmem:[%s2557_s4 + $0x8] sm:$0xff]   ;;  %v1867_v24 = vld [vmem:[%s2557_s4 + $0x10] sm:$0xff]   ;;  %s1688_s21 = sshll.u32 %s2599_s27, 8 }
  0x24   : > { %v1849_v3 = vld [vmem:[%s2067_s26] sm:$0xff]   ;;  %v1850_v5 = vld [vmem:[%s2067_s26 + $0x8] sm:$0xff]   ;;  %v1851_v7 = vld [vmem:[%s2067_s26 + $0x10] sm:$0xff]   ;;  %s2131_s30 = scalar_lea.vmem %s2553_s0, %s1688_s21 }
  0x25   : > { %1734 = vmatpush3.bf16.msra.mxu1 %v1858_v1  ;;  %471 = vxpose.xlu0.c.b16.start [1/8] (narrow) %v1849_v3, 64  ;;  %v1852_v8 = vld [vmem:[%s2067_s26 + $0x18] sm:$0xff]   ;;  %v1853_v10 = vld [vmem:[%s2067_s26 + $0x20] sm:$0xff]   ;;  %v1854_v12 = vld [vmem:[%s2067_s26 + $0x28] sm:$0xff]  }
  0x26   : > { %1735 = vmatprep.subr.bf16.mxu1 %v1859_v2  ;;  %1779 = vmatprep.subr.bf16.mxu0 %v1849_v3  ;;  %v1855_v14 = vld [vmem:[%s2067_s26 + $0x30] sm:$0xff]   ;;  %v1856_v16 = vld [vmem:[%s2067_s26 + $0x38] sm:$0xff]   ;;  %v1869_v28 = vld [vmem:[%s2557_s4 + $0x20] sm:$0xff]   ;;  %s2478_s26 = scalar_lea.vmem %s2561_s8, %s1688_s21 }
  0x27   : > { %1780 = vmatpush3.bf16.msra.mxu0 %v1849_v3  ;;  %v1868_v26 = vld [vmem:[%s2557_s4 + $0x18] sm:$0xff]   ;;  %v1870_v29 = vld [vmem:[%s2557_s4 + $0x28] sm:$0xff]   ;;  %v1871_v30 = vld [vmem:[%s2557_s4 + $0x30] sm:$0xff]  }
  0x28   : > { %1781 = vmatprep.subr.bf16.mxu0 %v1850_v5  ;;  %v1872_v31 = vld [vmem:[%s2557_s4 + $0x38] sm:$0xff]   ;;  %v2137_v32 = vld [vmem:[%s2131_s30 + $0x8] sm:$0xff]  ;;  %v2145_v35 = vld [vmem:[%s2131_s30] sm:$0xff] }
  0x29   : > { %1736 = vmatpush3.bf16.msra.mxu1 %v1859_v2  ;;  %472 = vxpose.xlu0.c.b16.cont [2/8] (narrow) %v1850_v5, 64  ;;  %v2140_v33 = vld [vmem:[%s2131_s30 + $0x18] sm:$0xff]  ;;  %v2148_v36 = vld [vmem:[%s2131_s30 + $0x10] sm:$0xff]  ;;  %v2151_v37 = vld [vmem:[%s2131_s30 + $0x28] sm:$0xff] }
  0x2a   : > { %1737 = vmatprep.subr.bf16.mxu1 %v1860_v4  ;;  %v1077_v34 = vpack.c.bf16 %v2140_v33, %v2137_v32  ;;  %v2154_v38 = vld [vmem:[%s2131_s30 + $0x38] sm:$0xff]  ;;  %v1076_v39 = vpack.c.bf16 %v2148_v36, %v2145_v35  ;;  %v2161_v41 = vld [vmem:[%s2131_s30 + $0x20] sm:$0xff]  ;;  %v2164_v42 = vld [vmem:[%s2131_s30 + $0x30] sm:$0xff] }
  0x2b   : > { %1782 = vmatpush3.bf16.msra.mxu0 %v1850_v5  ;;  %v1079_v40 = vpack.c.bf16 %v2154_v38, %v2151_v37  ;;  %v2167_v43 = vld [vmem:[%s2131_s30 + $0x48] sm:$0xff]  ;;  %v2170_v44 = vld [vmem:[%s2131_s30 + $0x58] sm:$0xff]  ;;  %v1078_v45 = vpack.c.bf16 %v2164_v42, %v2161_v41  ;;  %v2177_v47 = vld [vmem:[%s2131_s30 + $0x40] sm:$0xff] }
  0x2c   : > { %1783 = vmatprep.subr.bf16.mxu0 %v1851_v7  ;;  %v1081_v46 = vpack.c.bf16 %v2170_v44, %v2167_v43  ;;  %v2180_v48 = vld [vmem:[%s2131_s30 + $0x50] sm:$0xff]  ;;  %v2183_v49 = vld [vmem:[%s2131_s30 + $0x68] sm:$0xff]  ;;  %v2186_v50 = vld [vmem:[%s2131_s30 + $0x78] sm:$0xff] }
  0x2d   : > { %1738 = vmatpush3.bf16.msra.mxu1 %v1860_v4  ;;  %473 = vxpose.xlu0.c.b16.cont [3/8] (narrow) %v1851_v7, 64  ;;  %v1080_v51 = vpack.c.bf16 %v2180_v48, %v2177_v47  ;;  %v1083_v52 = vpack.c.bf16 %v2186_v50, %v2183_v49  ;;  %v2193_v53 = vld [vmem:[%s2131_s30 + $0x60] sm:$0xff]  ;;  %v2196_v54 = vld [vmem:[%s2131_s30 + $0x70] sm:$0xff]  ;;  %v2199_v55 = vld [vmem:[%s2131_s30 + $0x88] sm:$0xff] }
  0x2e   : > { %1739 = vmatprep.subr.bf16.mxu1 %v1861_v6  ;;  %v2202_v56 = vld [vmem:[%s2131_s30 + $0x98] sm:$0xff]  ;;  %v1082_v57 = vpack.c.bf16 %v2196_v54, %v2193_v53  ;;  %v2209_v59 = vld [vmem:[%s2131_s30 + $0x80] sm:$0xff]  ;;  %v2212_v60 = vld [vmem:[%s2131_s30 + $0x90] sm:$0xff] }
  0x2f   : > { %1784 = vmatpush3.bf16.msra.mxu0 %v1851_v7  ;;  %v1085_v58 = vpack.c.bf16 %v2202_v56, %v2199_v55  ;;  %v2215_v61 = vld [vmem:[%s2131_s30 + $0xa8] sm:$0xff]  ;;  %v2218_v62 = vld [vmem:[%s2131_s30 + $0xb8] sm:$0xff]  ;;  %v1084_v63 = vpack.c.bf16 %v2212_v60, %v2209_v59  ;;  %v2225_v1 = vld [vmem:[%s2131_s30 + $0xa0] sm:$0xff] }
  0x30   : > { %1785 = vmatprep.subr.bf16.mxu0 %v1852_v8  ;;  %2575 = vst [vmem:[#allocation8_spill] sm:$0xff] %v2218_v62  ;;  %v1087_v0 = vpack.c.bf16 %v2218_v62, %v2215_v61  ;;  %v2228_v2 = vld [vmem:[%s2131_s30 + $0xb0] sm:$0xff]  ;;  %v2233_v4 = vld [vmem:[%s2131_s30 + $0xc8] sm:$0xff]  ;;  %v2236_v5 = vld [vmem:[%s2131_s30 + $0xd8] sm:$0xff] }
  0x31   : > { %1740 = vmatpush3.bf16.msra.mxu1 %v1861_v6  ;;  %474 = vxpose.xlu0.c.b16.cont [4/8] (narrow) %v1852_v8, 64  ;;  %2576 = vst [vmem:[#allocation9_spill] sm:$0xff] %v2228_v2  ;;  %v1086_v3 = vpack.c.bf16 %v2228_v2, %v2225_v1  ;;  %2577 = vst [vmem:[#allocation10_spill] sm:$0xff] %v2233_v4  ;;  %v1089_v6 = vpack.c.bf16 %v2236_v5, %v2233_v4  ;;  %v2241_v7 = vld [vmem:[%s2131_s30 + $0xc0] sm:$0xff]  ;;  %v1878_v17 = vld [vmem:[%s2556_s3 + $0x28] sm:$0xff]  }
  0x32   : > { %1741 = vmatprep.subr.bf16.mxu1 %v1862_v9  ;;  %2578 = vst [vmem:[#allocation11_spill] sm:$0xff] %v2236_v5  ;;  %2579 = vst [vmem:[#allocation12_spill] sm:$0xff] %v2241_v7 }
  0x33   : > { %1786 = vmatpush3.bf16.msra.mxu0 %v1852_v8  ;;  %v2244_v8 = vld [vmem:[%s2131_s30 + $0xd0] sm:$0xff] }
  0x34   : > { %1787 = vmatprep.subr.bf16.mxu0 %v1853_v10  ;;  %2580 = vst [vmem:[#allocation13_spill] sm:$0xff] %v2244_v8 }
  0x35   : > { %1742 = vmatpush3.bf16.msra.mxu1 %v1862_v9  ;;  %475 = vxpose.xlu0.c.b16.cont [5/8] (narrow) %v1853_v10, 64  ;;  %v1088_v9 = vpack.c.bf16 %v2244_v8, %v2241_v7 }
  0x36   : > { %1743 = vmatprep.subr.bf16.mxu1 %v1863_v11 }
  0x37   : > { %1788 = vmatpush3.bf16.msra.mxu0 %v1853_v10  ;;  %v2249_v10 = vld [vmem:[%s2131_s30 + $0xe8] sm:$0xff] }
  0x38   : > { %1789 = vmatprep.subr.bf16.mxu0 %v1854_v12  ;;  %2581 = vst [vmem:[#allocation14_spill] sm:$0xff] %v2249_v10 }
  0x39   : > { %1744 = vmatpush3.bf16.msra.mxu1 %v1863_v11  ;;  %476 = vxpose.xlu0.c.b16.cont [6/8] (narrow) %v1854_v12, 64  ;;  %v1071_v11 = vld [vmem:[%s2131_s30 + $0xf8] sm:$0xff] }
  0x3a   : > { %1745 = vmatprep.subr.bf16.mxu1 %v1864_v13 }
  0x3b   : > { %1790 = vmatpush3.bf16.msra.mxu0 %v1854_v12  ;;  %v1091_v12 = vpack.c.bf16 %v1071_v11, %v2249_v10 }
  0x3c   : > { %1791 = vmatprep.subr.bf16.mxu0 %v1855_v14 }
  0x3d   : > { %1746 = vmatpush3.bf16.msra.mxu1 %v1864_v13  ;;  %477 = vxpose.xlu0.c.b16.cont [7/8] (narrow) %v1855_v14, 64  ;;  %v2254_v13 = vld [vmem:[%s2131_s30 + $0xe0] sm:$0xff] }
  0x3e   : > { %1755 = vmatprep.subr.bf16.mxu1 %v1865_v15  ;;  %2582 = vst [vmem:[#allocation15_spill] sm:$0xff] %v2254_v13 }
  0x3f   : > { %1792 = vmatpush3.bf16.msra.mxu0 %v1855_v14  ;;  %v2257_v14 = vld [vmem:[%s2131_s30 + $0xf0] sm:$0xff] }
  0x40   : > { %1793 = vmatprep.subr.bf16.mxu0 %v1856_v16  ;;  %2583 = vst [vmem:[#allocation16_spill] sm:$0xff] %v2257_v14 }
  0x41   : > { %478 = vxpose.xlu0.c.b16.end [8/8] (narrow) %v1856_v16, 64 }
  0x43   : > { %1794 = vmatpush3.bf16.msra.mxu0 %v1856_v16  ;;  %v1877_v16 = vld [vmem:[%s2556_s3 + $0x20] sm:$0xff]  }
  0x46   : > { %1796 = vmatmul.mubr.bf16.vlgmr.msra.gmra.mrb[0].mxu0 %v1874_v18  ;;  %v2562_v18 = vmov 0  }
  0x47   : > { %1799 = vmatprep.mubr.bf16.mxu0 %v1875_v19  ;;  %1847 = vset.pattern.permute.xlu1 %v2562_v18  ;;  %v1879_v19 = vld [vmem:[%s2556_s3 + $0x30] sm:$0xff]  }
  0x4a   : > { %1848 = vset.pattern.permute.xlu0 %v2562_v18 }
  0x4e   : > { %1800 = vmatmul.mubr.bf16.gmra.mrb[4].mxu0 %v1876_v20  ;;  %v1880_v20 = vld [vmem:[%s2556_s3 + $0x38] sm:$0xff]  }
  0x4f   : > { %1803 = vmatprep.mubr.bf16.mxu0 %v1877_v16  ;;  %v625_v16 = vstv %s1661_s19 }
  0x56   : > { %1804 = vmatmul.mubr.bf16.gmra.mrb[8].mxu0 %v1878_v17 }
  0x57   : > { %1807 = vmatprep.mubr.bf16.mxu0 %v1879_v19 }
  0x5e   : > { %1808 = vmatmul.mubr.bf16.gmra.mrb[12].mxu0 %v1880_v20 }
  0x5f   : > { %1404 = vmatprep.mubr.bf16.mxu0 %v2562_v18 }
  0x8b   : > { %v479_v21 = vpop.trf.xlu0 }
  0x8c   : > { %1747 = vmatprep.mubr.bf16.mxu1 %v479_v21 }
  0x8f   : > { %v480_v23 = vpop.trf.xlu0 }
  0x90   : > { %1748 = vmatmul.mubr.bf16.vlgmr.msra.gmra.mrb[0].mxu1 %v480_v23 }
  0x91   : > { %1756 = vmatpush3.bf16.msra.mxu1 %v1865_v15  ;;  %v1090_v15 = vpack.c.bf16 %v2257_v14, %v2254_v13 }
  0x92   : > { %1757 = vmatprep.subr.bf16.mxu1 %v1866_v22 }
  0x93   : > { %v481_v25 = vpop.trf.xlu0 }
  0x94   : > { %1751 = vmatprep.mubr.bf16.mxu1 %v481_v25 }
  0x95   : > { %1758 = vmatpush3.bf16.msra.mxu1 %v1866_v22  ;;  %v768_v22 = vld [vmem:[%s2559_s6 + $0x20] sm:$0xff] }
  0x96   : > { %1759 = vmatprep.subr.bf16.mxu1 %v1867_v24 }
  0x97   : > { %v482_v27 = vpop.trf.xlu0 }
  0x98   : > { %1752 = vmatmul.mubr.bf16.gmra.mrb[4].mxu1 %v482_v27 }
  0x99   : > { %1760 = vmatpush3.bf16.msra.mxu1 %v1867_v24  ;;  %1771 = vmatprep.mubr.bf16.mxu1 %v479_v21  ;;  %v764_v21 = vld [vmem:[%s2559_s6] sm:$0xff] }
  0x9a   : > { %1761 = vmatprep.subr.bf16.mxu1 %v1868_v26  ;;  %782 = vperm.xlu0 %1848, %v764_v21   ;;  %v772_v24 = vld [vmem:[%s2559_s6 + $0x40] sm:$0xff] }
  0x9d   : > { %1762 = vmatpush3.bf16.msra.mxu1 %v1868_v26  ;;  %v776_v26 = vld [vmem:[%s2559_s6 + $0x60] sm:$0xff] }
  0x9e   : > { %1763 = vmatprep.subr.bf16.mxu1 %v1869_v28  ;;  %802 = vperm.xlu0 %1848, %v768_v22  }
  0xa1   : > { %1764 = vmatpush3.bf16.msra.mxu1 %v1869_v28 }
  0xa2   : > { %1765 = vmatprep.subr.bf16.mxu1 %v1870_v29 }
  0xa5   : > { %1766 = vmatpush3.bf16.msra.mxu1 %v1870_v29  ;;  %v1644_v29 = vld [vmem:[%s2558_s5] ss:$0 sm:$0xff] }
  0xa6   : > { %1767 = vmatprep.subr.bf16.mxu1 %v1871_v30 }
  0xa9   : > { %1768 = vmatpush3.bf16.msra.mxu1 %v1871_v30 }
  0xaa   : > { %1769 = vmatprep.subr.bf16.mxu1 %v1872_v31 }
  0xad   : > { %1770 = vmatpush3.bf16.msra.mxu1 %v1872_v31 }
  0xae   : > { %1140 = vmatprep.subr.bf16.mxu1 %v1077_v34 }
  0xb0   : > { %1772 = vmatmul.mubr.bf16.vlgmr.msra.gmra.mrb[8].mxu1 %v480_v23  ;;  %v770_v23 = vld [vmem:[%s2559_s6 + $0x30] sm:$0xff] }
  0xb1   : > { %1775 = vmatprep.mubr.bf16.mxu1 %v481_v25  ;;  %1141 = vmatpush1.bf16.msra.mxu1 %v1076_v39  ;;  %v774_v25 = vld [vmem:[%s2559_s6 + $0x50] sm:$0xff] }
  0xb2   : > { %1142 = vmatprep.subr.bf16.mxu1 %v1079_v40  ;;  %812 = vperm.xlu0 %1848, %v770_v23  }
  0xb5   : > { %1143 = vmatpush1.bf16.msra.mxu1 %v1078_v45 }
  0xb6   : > { %1144 = vmatprep.subr.bf16.mxu1 %v1081_v46  ;;  %822 = vperm.xlu0 %1848, %v772_v24  }
  0xb8   : > { %1776 = vmatmul.mubr.bf16.gmra.mrb[12].mxu1 %v482_v27  ;;  %v778_v27 = vld [vmem:[%s2559_s6 + $0x70] sm:$0xff] }
  0xb9   : > { %1145 = vmatpush1.bf16.msra.mxu1 %v1080_v51  ;;  %1172 = vmatprep.mubr.bf16.mxu1 %v2562_v18 }
  0xba   : > { %1146 = vmatprep.subr.bf16.mxu1 %v1083_v52  ;;  %832 = vperm.xlu0 %1848, %v774_v25  }
  0xbd   : > { %1147 = vmatpush1.bf16.msra.mxu1 %v1082_v57 }
  0xbe   : > { %1148 = vmatprep.subr.bf16.mxu1 %v1085_v58  ;;  %842 = vperm.xlu0 %1848, %v776_v26  }
  0xc1   : > { %1149 = vmatpush1.bf16.msra.mxu1 %v1084_v63 }
  0xc2   : > { %1150 = vmatprep.subr.bf16.mxu1 %v1087_v0  ;;  %852 = vperm.xlu0 %1848, %v778_v27  }
  0xc5   : > { %1151 = vmatpush1.bf16.msra.mxu1 %v1086_v3 }
  0xc6   : > { %1152 = vmatprep.subr.bf16.mxu1 %v1089_v6 }
  0xc9   : > { %1153 = vmatpush1.bf16.msra.mxu1 %v1088_v9 }
  0xca   : > { %1154 = vmatprep.subr.bf16.mxu1 %v1091_v12 }
  0xcd   : > { %1155 = vmatpush1.bf16.msra.mxu1 %v1090_v15 }
 0x163   : > { %v1749_v28 = vpop.f32.mrb[0].mxu1 }
 0x164   : > { %v569_v30 = vpop.f32.mrb[1].mxu1  ;;  %v578_v34 = vadd.f32 %v1749_v28, %v1644_v29 }
 0x165   : > { %v1750_v31 = vpop.f32.mrb[2].mxu1  ;;  %v570_v45 = vadd.f32 %v1644_v29, %v569_v30 }
 0x166   : > { %v581_v39 = vadd.f32 %v1750_v31, %v1644_v29  ;;  %v572_v40 = vpop.f32.mrb[3].mxu1 }
 0x167   : > { %v573_v46 = vadd.f32 %v1644_v29, %v572_v40 }
 0x168   : > { %v601_v51 = vpack.c.bf16 %v581_v39, %v578_v34 }
 0x169   : > { %v600_v52 = vpack.c.bf16 %v573_v46, %v570_v45 }
 0x16b   : > { %1173 = vmatmul.mubr.bf16.vlgmr.msra.gmra.mrb[16].mxu1 %v600_v52  ;;  %v1753_v57 = vpop.f32.mrb[4].mxu1 }
 0x16c   : > { %v594_v58 = vadd.f32 %v1753_v57, %v1644_v29  ;;  %v585_v63 = vpop.f32.mrb[5].mxu1  ;;  %1182 = vmatprep.mubr.bf16.mxu1 %v2562_v18 }
 0x16d   : > { %v586_v0 = vadd.f32 %v1644_v29, %v585_v63  ;;  %v1754_v3 = vpop.f32.mrb[6].mxu1 }
 0x16e   : > { %v597_v6 = vadd.f32 %v1754_v3, %v1644_v29  ;;  %v588_v9 = vpop.f32.mrb[7].mxu1  ;;  %v766_v3 = vld [vmem:[%s2559_s6 + $0x10] sm:$0xff] }
 0x16f   : > { %v589_v11 = vadd.f32 %v1644_v29, %v588_v9  ;;  %v1797_v9 = vpop.f32.mrb[0].mxu0 }
 0x170   : > { %v603_v12 = vpack.c.bf16 %v597_v6, %v594_v58  ;;  %v767_v6 = vld [vmem:[%s2559_s6 + $0x18] sm:$0xff] }
 0x171   : > { %v602_v15 = vpack.c.bf16 %v589_v11, %v586_v0  ;;  %v765_v0 = vld [vmem:[%s2559_s6 + $0x8] sm:$0xff]  ;;  %v942_v11 = vpop.f32.mrb[1].mxu0 }
 0x173   : > { %1183 = vmatmul.mubr.bf16.gmra.mrb[20].mxu1 %v601_v51 }
 0x174   : > { %1192 = vmatprep.mubr.bf16.mxu1 %v2562_v18 }
 0x17b   : > { %1193 = vmatmul.mubr.bf16.gmra.mrb[24].mxu1 %v602_v15  ;;  %v1798_v15 = vpop.f32.mrb[2].mxu0 }
 0x17c   : > { %1202 = vmatprep.mubr.bf16.mxu1 %v2562_v18 }
 0x183   : > { %v1773_v17 = vpop.f32.mrb[8].mxu1  ;;  %1203 = vmatmul.mubr.bf16.gmra.mrb[28].mxu1 %v603_v12  ;;  %v769_v12 = vld [vmem:[%s2559_s6 + $0x28] sm:$0xff] }
 0x184   : > { %v717_v19 = vadd.f32 %v1773_v17, %v625_v16  ;;  %v708_v20 = vpop.f32.mrb[9].mxu1 }
 0x185   : > { %v709_v21 = vadd.f32 %v708_v20, %v625_v16  ;;  %v1774_v22 = vpop.f32.mrb[10].mxu1 }
 0x186   : > { %742 = vst.msk [vmem:[#allocation3 + $0x10] sm:$0xff] %vm739_vm0, %v717_v19  ;;  %v720_v23 = vadd.f32 %v1774_v22, %v625_v16  ;;  %v711_v24 = vpop.f32.mrb[11].mxu1  ;;  %v771_v19 = vld [vmem:[%s2559_s6 + $0x38] sm:$0xff] }
 0x187   : > { %740 = vst.msk [vmem:[#allocation3] sm:$0xff] %vm739_vm0, %v709_v21  ;;  %v712_v25 = vadd.f32 %v711_v24, %v625_v16  ;;  %v773_v24 = vld [vmem:[%s2559_s6 + $0x48] sm:$0xff] }
 0x188   : > { %743 = vst.msk [vmem:[#allocation3 + $0x18] sm:$0xff] %vm739_vm0, %v720_v23 }
 0x189   : > { %741 = vst.msk [vmem:[#allocation3 + $0x8] sm:$0xff] %vm739_vm0, %v712_v25 }
 0x18b   : > { %v1777_v26 = vpop.f32.mrb[12].mxu1 }
 0x18c   : > { %v733_v27 = vadd.f32 %v1777_v26, %v625_v16  ;;  %v724_v28 = vpop.f32.mrb[13].mxu1 }
 0x18d   : > { %v725_v29 = vadd.f32 %v724_v28, %v625_v16  ;;  %v1778_v30 = vpop.f32.mrb[14].mxu1  ;;  %v1094_v31 = vld [vmem:[#allocation3 + $0x10] sm:$0xff]  ;;  %v775_v28 = vld [vmem:[%s2559_s6 + $0x58] sm:$0xff] }
 0x18e   : > { %746 = vst.msk [vmem:[#allocation3 + $0x30] sm:$0xff] %vm739_vm0, %v733_v27  ;;  %v736_v34 = vadd.f32 %v1778_v30, %v625_v16  ;;  %1112 = vperm.xlu1 %1847, %v1094_v31   ;;  %v727_v39 = vpop.f32.mrb[15].mxu1  ;;  %v1092_v45 = vld [vmem:[#allocation3] sm:$0xff]  ;;  %v777_v30 = vld [vmem:[%s2559_s6 + $0x68] sm:$0xff] }
 0x18f   : > { %744 = vst.msk [vmem:[#allocation3 + $0x20] sm:$0xff] %vm739_vm0, %v725_v29  ;;  %v728_v40 = vadd.f32 %v727_v39, %v625_v16  ;;  %v1095_v46 = vld [vmem:[#allocation3 + $0x18] sm:$0xff]  ;;  %v945_v16 = vpop.f32.mrb[3].mxu0 }
 0x190   : > { %747 = vst.msk [vmem:[#allocation3 + $0x38] sm:$0xff] %vm739_vm0, %v736_v34  ;;  %v1093_v51 = vld [vmem:[#allocation3 + $0x8] sm:$0xff]  ;;  %v1801_v17 = vpop.f32.mrb[4].mxu0 }
 0x191   : > { %745 = vst.msk [vmem:[#allocation3 + $0x28] sm:$0xff] %vm739_vm0, %v728_v40  ;;  %v958_v20 = vpop.f32.mrb[5].mxu0  ;;  %v779_v40 = vld [vmem:[%s2559_s6 + $0x78] sm:$0xff] }
 0x192   : > { %1102 = vperm.xlu1 %1847, %v1092_v45   ;;  %v1802_v21 = vpop.f32.mrb[6].mxu0 }
 0x193   : > { %v961_v22 = vpop.f32.mrb[7].mxu0 }
 0x194   : > { %v2327_v23 = vpop.f32.mrb[8].mxu0 }
 0x195   : > { %v1098_v52 = vld [vmem:[#allocation3 + $0x30] sm:$0xff]  ;;  %v974_v25 = vpop.f32.mrb[9].mxu0 }
 0x196   : > { %1117 = vperm.xlu1 %1847, %v1095_v46   ;;  %v1096_v57 = vld [vmem:[#allocation3 + $0x20] sm:$0xff]  ;;  %v2332_v26 = vpop.f32.mrb[10].mxu0 }
 0x197   : > { %v1099_v63 = vld [vmem:[#allocation3 + $0x38] sm:$0xff]  ;;  %v2334_v27 = vpop.f32.mrb[11].mxu0 }
 0x198   : > { %v1097_v58 = vld [vmem:[#allocation3 + $0x28] sm:$0xff]  ;;  %v2339_v29 = vpop.f32.mrb[12].mxu0 }
 0x199   : > { %v2344_v31 = vpop.f32.mrb[13].mxu0 }
 0x19a   : > { %1107 = vperm.xlu1 %1847, %v1093_v51   ;;  %v2346_v34 = vpop.f32.mrb[14].mxu0 }
 0x19b   : > { %v2348_v39 = vpop.f32.mrb[15].mxu0 }
 0x19e   : > { %1132 = vperm.xlu1 %1847, %v1098_v52  }
 0x1a2   : > { %1122 = vperm.xlu1 %1847, %v1096_v57  }
 0x1a6   : > { %1127 = vperm.xlu1 %1847, %v1097_v58  }
 0x1aa   : > { %1137 = vperm.xlu1 %1847, %v1099_v63   ;;  %v783_v63 = vpop.permute.xlu0 %782 }
 0x1ae   : > { %787 = vperm.xlu1 %1847, %v765_v0  }
 0x1b2   : > { %792 = vperm.xlu1 %1847, %v766_v3   ;;  %v803_v3 = vpop.permute.xlu0 %802 }
 0x1b6   : > { %797 = vperm.xlu1 %1847, %v767_v6  }
 0x1ba   : > { %807 = vperm.xlu1 %1847, %v769_v12   ;;  %v943_v12 = vadd.f32 %v942_v11, %v783_v63  ;;  %v959_v63 = vadd.f32 %v958_v20, %v803_v3 }
 0x1be   : > { %817 = vperm.xlu1 %1847, %v771_v19   ;;  %v2365_v19 = vstv %s1005_s23 }
 0x1c2   : > { %827 = vperm.xlu1 %1847, %v773_v24  }
 0x1c6   : > { %837 = vperm.xlu1 %1847, %v775_v28   ;;  %v1007_v28 = vmul.f32 %v2365_v19, %v943_v12 }
 0x1ca   : > { %847 = vperm.xlu1 %1847, %v777_v30  }
 0x1ce   : > { %857 = vperm.xlu1 %1847, %v779_v40   ;;  %v813_v40 = vpop.permute.xlu0 %812 }
 0x1d2   : > { %v823_v5 = vpop.permute.xlu0 %822 }
 0x1d6   : > { %v833_v2 = vpop.permute.xlu0 %832 }
 0x20d   : > { %v2353_v45 = vpop.permute.xlu1 %1112 }
 0x211   : > { %v1103_v46 = vpop.permute.xlu1 %1102 }
 0x215   : > { %v2355_v51 = vpop.permute.xlu1 %1117 }
 0x219   : > { %v1108_v52 = vpop.permute.xlu1 %1107 }
 0x21d   : > { %v2357_v57 = vpop.permute.xlu1 %1132 }
 0x221   : > { %v2359_v58 = vpop.permute.xlu1 %1122 }
 0x225   : > { %v2361_v0 = vpop.permute.xlu1 %1127 }
 0x229   : > { %v2363_v6 = vpop.permute.xlu1 %1137 }
 0x22d   : > { %v788_v24 = vpop.permute.xlu1 %787 }
 0x22e   : > { %v946_v30 = vadd.f32 %v945_v16, %v788_v24  ;;  %v1011_v16 = vmul.f32 %v2365_v19, %v959_v63  ;;  %v967_v24 = vadd.f32 %v1801_v17, %v813_v40  ;;  %v843_v17 = vpop.permute.xlu0 %842  ;;  %v983_v63 = vadd.f32 %v2327_v23, %v833_v2 }
 0x230   : > { %v1008_v18 = vmul.f32 %v2365_v19, %v946_v30 }
 0x231   : > { %v793_v14 = vpop.permute.xlu1 %792 }
 0x232   : > { %v951_v10 = vadd.f32 %v1797_v9, %v793_v14  ;;  %v1023_v13 = vpack.c.bf16 %v1008_v18, %v1007_v28  ;;  %v975_v18 = vadd.f32 %v974_v25, %v823_v5 }
 0x234   : > { %1032 = vst.msk [vmem:[#allocation4] sm:$0xff] %vm1031_vm1, %v1023_v13  ;;  %v1009_v4 = vmul.f32 %v2365_v19, %v951_v10  ;;  %v1013_v10 = vmul.f32 %v2365_v19, %v967_v24  ;;  %v1015_v28 = vmul.f32 %v2365_v19, %v975_v18  ;;  %v853_v18 = vpop.permute.xlu0 %852 }
 0x235   : > { %v798_v8 = vpop.permute.xlu1 %797 }
 0x236   : > { %v954_v11 = vadd.f32 %v1798_v15, %v798_v8 }
 0x238   : > { %v1010_v7 = vmul.f32 %v2365_v19, %v954_v11 }
 0x239   : > { %v808_v62 = vpop.permute.xlu1 %807 }
 0x23a   : > { %v1024_v12 = vpack.c.bf16 %v1010_v7, %v1009_v4  ;;  %v962_v30 = vadd.f32 %v961_v22, %v808_v62 }
 0x23c   : > { %1033 = vst.msk [vmem:[#allocation4 + $0x8] sm:$0xff] %vm1031_vm1, %v1024_v12  ;;  %v1012_v14 = vmul.f32 %v2365_v19, %v962_v30 }
 0x23d   : > { %v818_v13 = vpop.permute.xlu1 %817 }
 0x23e   : > { %v970_v9 = vadd.f32 %v1802_v21, %v818_v13  ;;  %v1025_v8 = vpack.c.bf16 %v1012_v14, %v1011_v16  ;;  %v1174_v15 = vpop.f32.mrb[16].mxu1  ;;  %v991_v16 = vadd.f32 %v2344_v31, %v843_v17  ;;  %v1017_v14 = vmul.f32 %v2365_v19, %v983_v63 }
 0x23f   : > { %v2376_v20 = vadd.f32 %v1174_v15, %v1103_v46  ;;  %v1176_v3 = vpop.f32.mrb[17].mxu1 }
 0x240   : > { %v1014_v4 = vmul.f32 %v2365_v19, %v970_v9  ;;  %1034 = vst.msk [vmem:[#allocation4 + $0x10] sm:$0xff] %vm1031_vm1, %v1025_v8  ;;  %v2380_v62 = vadd.f32 %v1176_v3, %v1103_v46  ;;  %v1178_v7 = vpop.f32.mrb[18].mxu1  ;;  %v999_v3 = vadd.f32 %v2339_v29, %v853_v18 }
 0x241   : > { %v828_v22 = vpop.permute.xlu1 %827  ;;  %v2383_v5 = vadd.f32 %v1178_v7, %v1108_v52  ;;  %v1180_v21 = vpop.f32.mrb[19].mxu1 }
 0x242   : > { %v1026_v25 = vpack.c.bf16 %v1014_v4, %v1013_v10  ;;  %v978_v40 = vadd.f32 %v2334_v27, %v828_v22  ;;  %v2386_v11 = vadd.f32 %v1180_v21, %v1108_v52  ;;  %v1019_v10 = vmul.f32 %v2365_v19, %v991_v16 }
 0x243   : > { %v1021_v63 = vmul.f32 %v2365_v19, %v999_v3 }
 0x244   : > { %1035 = vst.msk [vmem:[#allocation4 + $0x18] sm:$0xff] %vm1031_vm1, %v1026_v25  ;;  %v1016_v46 = vmul.f32 %v2365_v19, %v978_v40 }
 0x245   : > { %v838_v12 = vpop.permute.xlu1 %837 }
 0x246   : > { %v1027_v24 = vpack.c.bf16 %v1016_v46, %v1015_v28  ;;  %v986_v30 = vadd.f32 %v2332_v26, %v838_v12  ;;  %v1184_v13 = vpop.f32.mrb[20].mxu1 }
 0x247   : > { %v2395_v27 = vadd.f32 %v1184_v13, %v2353_v45  ;;  %v1186_v52 = vpop.f32.mrb[21].mxu1 }
 0x248   : > { %1036 = vst.msk [vmem:[#allocation4 + $0x20] sm:$0xff] %vm1031_vm1, %v1027_v24  ;;  %v1018_v2 = vmul.f32 %v2365_v19, %v986_v30  ;;  %v2400_v23 = vadd.f32 %v1186_v52, %v2353_v45  ;;  %v1188_v9 = vpop.f32.mrb[22].mxu1 }
 0x249   : > { %v1213_v31 = vmax.f32 %v2376_v20, %v2395_v27  ;;  %v848_v26 = vpop.permute.xlu1 %847  ;;  %v2406_v8 = vadd.f32 %v1188_v9, %v2355_v51  ;;  %v1190_v15 = vpop.f32.mrb[23].mxu1 }
 0x24a   : > { %v1028_v4 = vpack.c.bf16 %v1018_v2, %v1017_v14  ;;  %v1226_v7 = vmax.f32 %v2380_v62, %v2400_v23  ;;  %v994_v45 = vadd.f32 %v2348_v39, %v848_v26  ;;  %v2413_v17 = vadd.f32 %v1190_v15, %v2355_v51 }
 0x24b   : > { %v1214_v22 = vmax.f32 %v2383_v5, %v2406_v8 }
 0x24c   : > { %1037 = vst.msk [vmem:[#allocation4 + $0x28] sm:$0xff] %vm1031_vm1, %v1028_v4  ;;  %v1020_v28 = vmul.f32 %v2365_v19, %v994_v45  ;;  %v1227_v21 = vmax.f32 %v2386_v11, %v2413_v17 }
 0x24d   : > { %v858_v29 = vpop.permute.xlu1 %857 }
 0x24e   : > { %v1029_v25 = vpack.c.bf16 %v1020_v28, %v1019_v10  ;;  %v1002_v40 = vadd.f32 %v2346_v34, %v858_v29  ;;  %v1194_v39 = vpop.f32.mrb[24].mxu1 }
 0x24f   : > { %v1195_v51 = vadd.f32 %v1194_v39, %v2359_v58  ;;  %v1196_v46 = vpop.f32.mrb[25].mxu1 }
 0x250   : > { %1038 = vst.msk [vmem:[#allocation4 + $0x30] sm:$0xff] %vm1031_vm1, %v1029_v25  ;;  %v1022_v12 = vmul.f32 %v2365_v19, %v1002_v40  ;;  %v2427_v16 = vadd.f32 %v1196_v46, %v2359_v58  ;;  %v1198_v24 = vpop.f32.mrb[26].mxu1 }
 0x251   : > { %v1215_v30 = vmax.f32 %v1213_v31, %v1195_v51  ;;  %v1199_v14 = vadd.f32 %v1198_v24, %v2361_v0  ;;  %v1200_v13 = vpop.f32.mrb[27].mxu1 }
 0x252   : > { %v1030_v18 = vpack.c.bf16 %v1022_v12, %v1021_v63  ;;  %v1228_v34 = vmax.f32 %v1226_v7, %v2427_v16  ;;  %v2432_v52 = vadd.f32 %v1200_v13, %v2361_v0 }
 0x253   : > { %v1216_v2 = vmax.f32 %v1214_v22, %v1199_v14 }
 0x254   : > { %1039 = vst.msk [vmem:[#allocation4 + $0x38] sm:$0xff] %vm1031_vm1, %v1030_v18  ;;  %v1229_v9 = vmax.f32 %v1227_v21, %v2432_v52 }
 0x256   : > { %v1204_v19 = vpop.f32.mrb[28].mxu1 }
 0x257   : > { %v1205_v58 = vadd.f32 %v1204_v19, %v2357_v57  ;;  %v1206_v26 = vpop.f32.mrb[29].mxu1 }
 0x258   : > { %v2438_v31 = vadd.f32 %v1206_v26, %v2357_v57  ;;  %v1208_v10 = vpop.f32.mrb[30].mxu1 }
 0x259   : > { %v1217_v15 = vmax.f32 %v1215_v30, %v1205_v58  ;;  %v1209_v3 = vadd.f32 %v1208_v10, %v2363_v6  ;;  %v1210_v4 = vpop.f32.mrb[31].mxu1 }
 0x25a   : > { %v1230_v0 = vmax.f32 %v1228_v34, %v2438_v31  ;;  %v2443_v7 = vadd.f32 %v1210_v4, %v2363_v6 }
 0x25b   : > { %v1218_v45 = vmax.f32 %v1216_v2, %v1209_v3 }
 0x25c   : > { %v1231_v22 = vmax.f32 %v1229_v9, %v2443_v7 }
 0x25d   : > { %v1219_v28 = vmax.f32 %v1217_v15, %v1218_v45 }
 0x25e   : > { %v1232_v21 = vmax.f32 %v1230_v0, %v1231_v22 }
 0x25f   : > { %v1220_v29 = vrot.slane %v1219_v28, 4 }
 0x260   : > { %v1233_v25 = vrot.slane %v1232_v21, 4 }
 0x261   : > { %v1221_v40 = vmax.f32 %v1219_v28, %v1220_v29 }
 0x262   : > { %v1234_v57 = vmax.f32 %v1232_v21, %v1233_v25 }
 0x263   : > { %v1222_v63 = vrot.slane %v1221_v40, 2 }
 0x264   : > { %v1235_v39 = vrot.slane %v1234_v57, 2 }
 0x265   : > { %v1223_v46 = vmax.f32 %v1221_v40, %v1222_v63 }
 0x266   : > { %v1236_v12 = vmax.f32 %v1234_v57, %v1235_v39 }
 0x267   : > { %v1224_v24 = vrot.slane %v1223_v46, 1 }
 0x268   : > { %v1237_v30 = vrot.slane %v1236_v12, 1 }
 0x269   : > { %v1225_v13 = vmax.f32 %v1223_v46, %v1224_v24 }
 0x26a   : > { %v1238_v18 = vmax.f32 %v1236_v12, %v1237_v30 }
 0x26b   : > { %v1239_v6 = vsub.f32 %v2376_v20, %v1225_v13  ;;  %v1241_v34 = vsub.f32 %v2383_v5, %v1225_v13  ;;  %v1243_v2 = vsub.f32 %v2395_v27, %v1225_v13  ;;  %v1245_v9 = vsub.f32 %v2406_v8, %v1225_v13 }
 0x26c   : > { %v1247_v19 = vsub.f32 %v1195_v51, %v1225_v13  ;;  %v1249_v26 = vsub.f32 %v1199_v14, %v1225_v13  ;;  %v1251_v10 = vsub.f32 %v1205_v58, %v1225_v13  ;;  %v1253_v15 = vsub.f32 %v1209_v3, %v1225_v13 }
 0x26d   : > { %v1255_v4 = vmul.f32 1.442695, %v1239_v6  ;;  %v1259_v0 = vmul.f32 1.442695, %v1241_v34  ;;  %v1240_v45 = vsub.f32 %v2380_v62, %v1238_v18  ;;  %v1263_v22 = vmul.f32 1.442695, %v1243_v2 }
 0x26e   : > { %v1242_v28 = vsub.f32 %v2386_v11, %v1238_v18  ;;  %v1267_v21 = vmul.f32 1.442695, %v1245_v9  ;;  %v1244_v20 = vsub.f32 %v2400_v23, %v1238_v18  ;;  %v1246_v5 = vsub.f32 %v2413_v17, %v1238_v18 }
 0x26f   : > { %1881 = vpow2.f32 %v1255_v4  ;;  %v1248_v27 = vsub.f32 %v2427_v16, %v1238_v18  ;;  %v1250_v8 = vsub.f32 %v2432_v52, %v1238_v18  ;;  %v1271_v51 = vmul.f32 1.442695, %v1247_v19 }
 0x270   : > { %1883 = vpow2.f32 %v1259_v0  ;;  %v1252_v14 = vsub.f32 %v2438_v31, %v1238_v18  ;;  %v1254_v58 = vsub.f32 %v2443_v7, %v1238_v18  ;;  %v1275_v62 = vmul.f32 1.442695, %v1249_v26 }
 0x271   : > { %1885 = vpow2.f32 %v1263_v22  ;;  %v1257_v3 = vmul.f32 1.442695, %v1240_v45  ;;  %v1261_v11 = vmul.f32 1.442695, %v1242_v28  ;;  %v1279_v29 = vmul.f32 1.442695, %v1251_v10 }
 0x272   : > { %1887 = vpow2.f32 %v1267_v21  ;;  %v1265_v23 = vmul.f32 1.442695, %v1244_v20  ;;  %v1283_v25 = vmul.f32 1.442695, %v1253_v15  ;;  %v1269_v17 = vmul.f32 1.442695, %v1246_v5 }
 0x273   : > { %1889 = vpow2.f32 %v1271_v51  ;;  %v1273_v31 = vmul.f32 1.442695, %v1248_v27  ;;  %v1277_v57 = vmul.f32 1.442695, %v1250_v8  ;;  %v1281_v46 = vmul.f32 1.442695, %v1252_v14 }
 0x274   : > { %1891 = vpow2.f32 %v1275_v62  ;;  %v1285_v13 = vmul.f32 1.442695, %v1254_v58 }
 0x275   : > { %1893 = vpow2.f32 %v1257_v3 }
 0x276   : > { %1895 = vpow2.f32 %v1261_v11 }
 0x277   : > { %1897 = vpow2.f32 %v1279_v29 }
 0x278   : > { %1899 = vpow2.f32 %v1265_v23 }
 0x279   : > { %v1882_v16 = vpop.eup %1881  ;;  %1901 = vpow2.f32 %v1283_v25 }
 0x27a   : > { %v1884_v52 = vpop.eup %1883  ;;  %1903 = vpow2.f32 %v1269_v17 }
 0x27b   : > { %v1287_v7 = vadd.f32 %v1884_v52, %v1882_v16  ;;  %v1886_v40 = vpop.eup %1885  ;;  %1905 = vpow2.f32 %v1273_v31 }
 0x27c   : > { %v1888_v39 = vpop.eup %1887  ;;  %1907 = vpow2.f32 %v1277_v57 }
 0x27d   : > { %v1288_v63 = vadd.f32 %v1886_v40, %v1287_v7  ;;  %v1890_v12 = vpop.eup %1889  ;;  %1909 = vpow2.f32 %v1281_v46 }
 0x27e   : > { %v1892_v30 = vpop.eup %1891  ;;  %1911 = vpow2.f32 %v1285_v13 }
 0x27f   : > { %v1289_v24 = vadd.f32 %v1888_v39, %v1288_v63  ;;  %v1894_v18 = vpop.eup %1893 }
 0x280   : > { %v1896_v34 = vpop.eup %1895 }
 0x281   : > { %v1290_v6 = vadd.f32 %v1890_v12, %v1289_v24  ;;  %v1898_v2 = vpop.eup %1897  ;;  %v1300_v19 = vadd.f32 %v1896_v34, %v1894_v18 }
 0x282   : > { %v1900_v26 = vpop.eup %1899 }
 0x283   : > { %v1291_v9 = vadd.f32 %v1892_v30, %v1290_v6  ;;  %v1902_v10 = vpop.eup %1901  ;;  %v1301_v4 = vadd.f32 %v1900_v26, %v1300_v19 }
 0x284   : > { %v1904_v0 = vpop.eup %1903 }
 0x285   : > { %v1292_v15 = vadd.f32 %v1898_v2, %v1291_v9  ;;  %v1302_v22 = vadd.f32 %v1904_v0, %v1301_v4  ;;  %v1906_v28 = vpop.eup %1905 }
 0x286   : > { %v1908_v5 = vpop.eup %1907 }
 0x287   : > { %v1293_v45 = vadd.f32 %v1902_v10, %v1292_v15  ;;  %v1303_v20 = vadd.f32 %v1906_v28, %v1302_v22  ;;  %v1910_v51 = vpop.eup %1909 }
 0x288   : > { %v1912_v62 = vpop.eup %1911 }
 0x289   : > { %v1294_v21 = vrot.slane %v1293_v45, 4  ;;  %v1304_v8 = vadd.f32 %v1908_v5, %v1303_v20 }
 0x28b   : > { %v1295_v27 = vadd.f32 %v1294_v21, %v1293_v45  ;;  %v1305_v58 = vadd.f32 %v1910_v51, %v1304_v8 }
 0x28d   : > { %v1296_v14 = vrot.slane %v1295_v27, 2  ;;  %v1306_v11 = vadd.f32 %v1912_v62, %v1305_v58 }
 0x28f   : > { %v1297_v3 = vadd.f32 %v1296_v14, %v1295_v27  ;;  %v1307_v23 = vrot.slane %v1306_v11, 4 }
 0x291   : > { %v1298_v29 = vrot.slane %v1297_v3, 1  ;;  %v1308_v17 = vadd.f32 %v1307_v23, %v1306_v11 }
 0x293   : > { %v1299_v25 = vadd.f32 %v1298_v29, %v1297_v3  ;;  %v1309_v31 = vrot.slane %v1308_v17, 2 }
 0x295   : > { %1913 = vrcp.f32 %v1299_v25  ;;  %v1310_v7 = vadd.f32 %v1309_v31, %v1308_v17 }
 0x297   : > { %v1311_v57 = vrot.slane %v1310_v7, 1 }
 0x299   : > { %v1312_v63 = vadd.f32 %v1311_v57, %v1310_v7 }
 0x29b   : > { %1915 = vrcp.f32 %v1312_v63 }
 0x29f   : > { %v1914_v46 = vpop.eup %1913 }
 0x2a0   : > { %v1315_v24 = vmul.f32 %v1914_v46, %v1882_v16  ;;  %v1317_v13 = vmul.f32 %v1914_v46, %v1884_v52  ;;  %v1319_v6 = vmul.f32 %v1914_v46, %v1886_v40  ;;  %v1321_v9 = vmul.f32 %v1914_v46, %v1888_v39 }
 0x2a1   : > { %v1323_v19 = vmul.f32 %v1914_v46, %v1890_v12  ;;  %v1325_v15 = vmul.f32 %v1914_v46, %v1892_v30  ;;  %v1327_v4 = vmul.f32 %v1914_v46, %v1898_v2  ;;  %v1329_v45 = vmul.f32 %v1914_v46, %v1902_v10  ;;  %v1339_v30 = vld [vmem:[#allocation4] sm:$0xff]  ;;  %v1341_v2 = vld [vmem:[#allocation4 + $0x10] sm:$0xff] }
 0x2a2   : > { %v1331_v22 = vpack.c.bf16 %v1317_v13, %v1315_v24  ;;  %v1333_v21 = vpack.c.bf16 %v1321_v9, %v1319_v6  ;;  %v1343_v10 = vld [vmem:[#allocation4 + $0x20] sm:$0xff] }
 0x2a3   : > { %v1335_v20 = vpack.c.bf16 %v1325_v15, %v1323_v19  ;;  %v1337_v27 = vpack.c.bf16 %v1329_v45, %v1327_v4 }
 0x2a5   : > { %v1916_v8 = vpop.eup %1915 }
 0x2a6   : > { %v1316_v14 = vmul.f32 %v1916_v8, %v1894_v18  ;;  %v1318_v58 = vmul.f32 %v1916_v8, %v1896_v34  ;;  %v1320_v3 = vmul.f32 %v1916_v8, %v1900_v26  ;;  %v1322_v11 = vmul.f32 %v1916_v8, %v1904_v0  ;;  %v1340_v34 = vld [vmem:[#allocation4 + $0x8] sm:$0xff]  ;;  %v1342_v26 = vld [vmem:[#allocation4 + $0x18] sm:$0xff] }
 0x2a7   : > { %v1324_v29 = vmul.f32 %v1916_v8, %v1906_v28  ;;  %v1326_v23 = vmul.f32 %v1916_v8, %v1908_v5  ;;  %v1328_v25 = vmul.f32 %v1916_v8, %v1910_v51  ;;  %v1330_v16 = vmul.f32 %v1916_v8, %v1912_v62  ;;  %v1344_v0 = vld [vmem:[#allocation4 + $0x28] sm:$0xff]  ;;  %v1345_v28 = vld [vmem:[#allocation4 + $0x30] sm:$0xff]  ;;  %v1346_v5 = vld [vmem:[#allocation4 + $0x38] sm:$0xff] }
 0x2a8   : > { %v1332_v52 = vpack.c.bf16 %v1318_v58, %v1316_v14  ;;  %v1334_v40 = vpack.c.bf16 %v1322_v11, %v1320_v3  ;;  %v2584_v18 = vmov 0  }
 0x2a9   : > { %v1336_v39 = vpack.c.bf16 %v1326_v23, %v1324_v29  ;;  %v1338_v12 = vpack.c.bf16 %v1330_v16, %v1328_v25  ;;  %v2585_v25 = vld [vmem:[#allocation9_spill] sm:$0xff] }
 0x2aa   : > { %1372 = vmatprep.subr.bf16.mxu0 %v1332_v52  ;;  %v2586_v52 = vld [vmem:[#allocation8_spill] sm:$0xff] }
 0x2ab   : > { %1373 = vmatpush1.bf16.msra.mxu0 %v1331_v22 }
 0x2ac   : > { %1374 = vmatprep.subr.bf16.mxu0 %v1334_v40 }
 0x2af   : > { %1375 = vmatpush1.bf16.msra.mxu0 %v1333_v21 }
 0x2b0   : > { %1376 = vmatprep.subr.bf16.mxu0 %v1336_v39  ;;  %v2587_v39 = vld [vmem:[#allocation12_spill] sm:$0xff] }
 0x2b3   : > { %1377 = vmatpush1.bf16.msra.mxu0 %v1335_v20 }
 0x2b4   : > { %1378 = vmatprep.subr.bf16.mxu0 %v1338_v12 }
 0x2b7   : > { %1379 = vmatpush1.bf16.msra.mxu0 %v1337_v27 }
 0x2ba   : > { %1678 = vmatmul.mubr.msk.bf16.vlgmr.msra.gmra.mrb[16].mxu0 %vm1031_vm1, %v1339_v30  ;;  %v2588_v30 = vld [vmem:[#allocation10_spill] sm:$0xff] }
 0x2bb   : > { %1414 = vmatprep.mubr.bf16.mxu0 %v2584_v18 }
 0x2c2   : > { %1679 = vmatmul.mubr.msk.bf16.gmra.mrb[20].mxu0 %vm1031_vm1, %v1340_v34  ;;  %v2589_v34 = vld [vmem:[#allocation13_spill] sm:$0xff] }
 0x2c3   : > { %1424 = vmatprep.mubr.bf16.mxu0 %v2584_v18 }
 0x2ca   : > { %1680 = vmatmul.mubr.msk.bf16.gmra.mrb[24].mxu0 %vm1031_vm1, %v1341_v2 }
 0x2cb   : > { %1434 = vmatprep.mubr.bf16.mxu0 %v2584_v18 }
 0x2d2   : > { %1681 = vmatmul.mubr.msk.bf16.gmra.mrb[28].mxu0 %vm1031_vm1, %v1342_v26 }
 0x2d3   : > { %1444 = vmatprep.mubr.bf16.mxu0 %v2584_v18 }
 0x2da   : > { %1682 = vmatmul.mubr.msk.bf16.gmra.mrb[32].mxu0 %vm1031_vm1, %v1343_v10  ;;  %v2590_v10 = vld [vmem:[#allocation11_spill] sm:$0xff] }
 0x2db   : > { %1454 = vmatprep.mubr.bf16.mxu0 %v2584_v18 }
 0x2e2   : > { %1683 = vmatmul.mubr.msk.bf16.gmra.mrb[36].mxu0 %vm1031_vm1, %v1344_v0 }
 0x2e3   : > { %1464 = vmatprep.mubr.bf16.mxu0 %v2584_v18 }
 0x2ea   : > { %1684 = vmatmul.mubr.msk.bf16.gmra.mrb[40].mxu0 %vm1031_vm1, %v1345_v28 }
 0x2eb   : > { %1474 = vmatprep.mubr.bf16.mxu0 %v2584_v18 }
 0x2f2   : > { %1685 = vmatmul.mubr.msk.bf16.gmra.mrb[44].mxu0 %vm1031_vm1, %v1346_v5  ;;  %v2591_v5 = vld [vmem:[#allocation15_spill] sm:$0xff] }
 0x38d   : > { %v1406_v51 = vpop.f32.mrb[16].mxu0 }
 0x38e   : > { %v1407_v62 = vadd.f32 %v1406_v51, %v2145_v35  ;;  %v1408_v17 = vpop.f32.mrb[17].mxu0 }
 0x38f   : > { %v1409_v31 = vadd.f32 %v1408_v17, %v2137_v32  ;;  %v1410_v7 = vpop.f32.mrb[18].mxu0  ;;  %v2592_v17 = vld [vmem:[#allocation14_spill] sm:$0xff] }
 0x390   : > { %1485 = vst [vmem:[%s2478_s26] sm:$0xff] %v1407_v62  ;;  %v1411_v57 = vadd.f32 %v1410_v7, %v2148_v36  ;;  %v1412_v63 = vpop.f32.mrb[19].mxu0 }
 0x391   : > { %1486 = vst [vmem:[%s2478_s26 + $0x8] sm:$0xff] %v1409_v31  ;;  %v1413_v46 = vadd.f32 %v1412_v63, %v2140_v33 }
 0x392   : > { %1487 = vst [vmem:[%s2478_s26 + $0x10] sm:$0xff] %v1411_v57  ;;  %v2593_v57 = vld [vmem:[#allocation16_spill] sm:$0xff] }
 0x393   : > { %1488 = vst [vmem:[%s2478_s26 + $0x18] sm:$0xff] %v1413_v46 }
 0x395   : > { %v1416_v24 = vpop.f32.mrb[20].mxu0 }
 0x396   : > { %v1417_v35 = vadd.f32 %v1416_v24, %v2161_v41  ;;  %v1418_v13 = vpop.f32.mrb[21].mxu0  ;;  %v1917_v24 = vld [vmem:[%s2131_s30 + $0xf8] sm:$0xff] }
 0x397   : > { %v1419_v32 = vadd.f32 %v1418_v13, %v2151_v37  ;;  %v1420_v6 = vpop.f32.mrb[22].mxu0 }
 0x398   : > { %1489 = vst [vmem:[%s2478_s26 + $0x20] sm:$0xff] %v1417_v35  ;;  %v1421_v36 = vadd.f32 %v1420_v6, %v2164_v42  ;;  %v1422_v9 = vpop.f32.mrb[23].mxu0 }
 0x399   : > { %1490 = vst [vmem:[%s2478_s26 + $0x28] sm:$0xff] %v1419_v32  ;;  %v1423_v33 = vadd.f32 %v1422_v9, %v2154_v38 }
 0x39a   : > { %1491 = vst [vmem:[%s2478_s26 + $0x30] sm:$0xff] %v1421_v36 }
 0x39b   : > { %1492 = vst [vmem:[%s2478_s26 + $0x38] sm:$0xff] %v1423_v33 }
 0x39d   : > { %v1426_v19 = vpop.f32.mrb[24].mxu0 }
 0x39e   : > { %v1427_v41 = vadd.f32 %v1426_v19, %v2177_v47  ;;  %v1428_v15 = vpop.f32.mrb[25].mxu0 }
 0x39f   : > { %v1429_v37 = vadd.f32 %v1428_v15, %v2167_v43  ;;  %v1430_v4 = vpop.f32.mrb[26].mxu0 }
 0x3a0   : > { %1493 = vst [vmem:[%s2478_s26 + $0x40] sm:$0xff] %v1427_v41  ;;  %v1431_v42 = vadd.f32 %v1430_v4, %v2180_v48  ;;  %v1432_v45 = vpop.f32.mrb[27].mxu0 }
 0x3a1   : > { %1494 = vst [vmem:[%s2478_s26 + $0x48] sm:$0xff] %v1429_v37  ;;  %v1433_v38 = vadd.f32 %v1432_v45, %v2170_v44 }
 0x3a2   : > { %1495 = vst [vmem:[%s2478_s26 + $0x50] sm:$0xff] %v1431_v42 }
 0x3a3   : > { %1496 = vst [vmem:[%s2478_s26 + $0x58] sm:$0xff] %v1433_v38 }
 0x3a5   : > { %v1436_v22 = vpop.f32.mrb[28].mxu0 }
 0x3a6   : > { %v1437_v47 = vadd.f32 %v1436_v22, %v2193_v53  ;;  %v1438_v21 = vpop.f32.mrb[29].mxu0 }
 0x3a7   : > { %v1439_v43 = vadd.f32 %v1438_v21, %v2183_v49  ;;  %v1440_v20 = vpop.f32.mrb[30].mxu0 }
 0x3a8   : > { %1497 = vst [vmem:[%s2478_s26 + $0x60] sm:$0xff] %v1437_v47  ;;  %v1441_v48 = vadd.f32 %v1440_v20, %v2196_v54  ;;  %v1442_v27 = vpop.f32.mrb[31].mxu0 }
 0x3a9   : > { %1498 = vst [vmem:[%s2478_s26 + $0x68] sm:$0xff] %v1439_v43  ;;  %v1443_v44 = vadd.f32 %v1442_v27, %v2186_v50 }
 0x3aa   : > { %1499 = vst [vmem:[%s2478_s26 + $0x70] sm:$0xff] %v1441_v48 }
 0x3ab   : > { %1500 = vst [vmem:[%s2478_s26 + $0x78] sm:$0xff] %v1443_v44 }
 0x3ad   : > { %v1446_v8 = vpop.f32.mrb[32].mxu0 }
 0x3ae   : > { %v1447_v53 = vadd.f32 %v1446_v8, %v2209_v59  ;;  %v1448_v14 = vpop.f32.mrb[33].mxu0 }
 0x3af   : > { %v1449_v49 = vadd.f32 %v1448_v14, %v2199_v55  ;;  %v1450_v58 = vpop.f32.mrb[34].mxu0 }
 0x3b0   : > { %1501 = vst [vmem:[%s2478_s26 + $0x80] sm:$0xff] %v1447_v53  ;;  %v1451_v54 = vadd.f32 %v1450_v58, %v2212_v60  ;;  %v1452_v3 = vpop.f32.mrb[35].mxu0 }
 0x3b1   : > { %1502 = vst [vmem:[%s2478_s26 + $0x88] sm:$0xff] %v1449_v49  ;;  %v1453_v50 = vadd.f32 %v1452_v3, %v2202_v56 }
 0x3b2   : > { %1503 = vst [vmem:[%s2478_s26 + $0x90] sm:$0xff] %v1451_v54 }
 0x3b3   : > { %1504 = vst [vmem:[%s2478_s26 + $0x98] sm:$0xff] %v1453_v50 }
 0x3b5   : > { %v1456_v11 = vpop.f32.mrb[36].mxu0 }
 0x3b6   : > { %v1457_v59 = vadd.f32 %v1456_v11, %v2225_v1  ;;  %v1458_v29 = vpop.f32.mrb[37].mxu0 }
 0x3b7   : > { %v1459_v55 = vadd.f32 %v1458_v29, %v2215_v61  ;;  %v1460_v23 = vpop.f32.mrb[38].mxu0 }
 0x3b8   : > { %1505 = vst [vmem:[%s2478_s26 + $0xa0] sm:$0xff] %v1457_v59  ;;  %v1461_v60 = vadd.f32 %v1460_v23, %v2585_v25  ;;  %v1462_v16 = vpop.f32.mrb[39].mxu0 }
 0x3b9   : > { %1506 = vst [vmem:[%s2478_s26 + $0xa8] sm:$0xff] %v1459_v55  ;;  %v1463_v56 = vadd.f32 %v1462_v16, %v2586_v52 }
 0x3ba   : > { %1507 = vst [vmem:[%s2478_s26 + $0xb0] sm:$0xff] %v1461_v60 }
 0x3bb   : > { %1508 = vst [vmem:[%s2478_s26 + $0xb8] sm:$0xff] %v1463_v56 }
 0x3bd   : > { %v1466_v40 = vpop.f32.mrb[40].mxu0 }
 0x3be   : > { %v1467_v1 = vadd.f32 %v1466_v40, %v2587_v39  ;;  %v1468_v12 = vpop.f32.mrb[41].mxu0 }
 0x3bf   : > { %v1469_v61 = vadd.f32 %v1468_v12, %v2588_v30  ;;  %v1470_v18 = vpop.f32.mrb[42].mxu0 }
 0x3c0   : > { %1509 = vst [vmem:[%s2478_s26 + $0xc0] sm:$0xff] %v1467_v1  ;;  %v1471_v2 = vadd.f32 %v1470_v18, %v2589_v34  ;;  %v1472_v26 = vpop.f32.mrb[43].mxu0 }
 0x3c1   : > { %1510 = vst [vmem:[%s2478_s26 + $0xc8] sm:$0xff] %v1469_v61  ;;  %v1473_v0 = vadd.f32 %v1472_v26, %v2590_v10 }
 0x3c2   : > { %1511 = vst [vmem:[%s2478_s26 + $0xd0] sm:$0xff] %v1471_v2 }
 0x3c3   : > { %1512 = vst [vmem:[%s2478_s26 + $0xd8] sm:$0xff] %v1473_v0 }
 0x3c5   : > { %v1476_v28 = vpop.f32.mrb[44].mxu0 }
 0x3c6   : > { %v1477_v51 = vadd.f32 %v1476_v28, %v2591_v5  ;;  %v1478_v62 = vpop.f32.mrb[45].mxu0 }
 0x3c7   : > { %v1479_v31 = vadd.f32 %v1478_v62, %v2592_v17  ;;  %v1480_v7 = vpop.f32.mrb[46].mxu0 }
 0x3c8   : > { %1513 = vst [vmem:[%s2478_s26 + $0xe0] sm:$0xff] %v1477_v51  ;;  %v1481_v63 = vadd.f32 %v1480_v7, %v2593_v57  ;;  %v1482_v46 = vpop.f32.mrb[47].mxu0 }
 0x3c9   : > { %1514 = vst [vmem:[%s2478_s26 + $0xe8] sm:$0xff] %v1479_v31  ;;  %v1483_v35 = vadd.f32 %v1917_v24, %v1482_v46 }
 0x3ca   : > { %1515 = vst [vmem:[%s2478_s26 + $0xf0] sm:$0xff] %v1481_v63 }
 0x3cb   : > { %1516 = vst [vmem:[%s2478_s26 + $0xf8] sm:$0xff] %v1483_v35 }
 0x3cc PF: > { %s19_s29 = sadd.s32 1, %s1959_s29   ;;  %s2594_s27 = smov %s1955_s28 }
 0x3cd   : > { %p16_p2 = scmp.ge.s32.totalorder %s19_s29, 4   ;;  %s2595_s28 = smov %s2597_s9 }
 0x3cf   :  { %18 = sbr.rel (!%p16_p2) target bundleno = 2 (0x2), region = 94 }
 0x3d6   :  { %1547 = vsyncpa [#allocation6], 1 }
 0x3d7   :  { %1549 = vsyncpa [#allocation6 + $0x1], 1 }

</bundles_post_ra>
